<compile_context>
chip_gen: v5e
topology: v5e:2x2
jax: 0.10.0
libtpu: 0.0.40
codegen_flags: <defaults>
</compile_context>

<pallas_src>
import functools

import jax
import jax.numpy as jnp
from jax.experimental import pallas as pl
from jax.experimental.pallas import tpu as pltpu

_WEIGHT_VMEM_BUDGET = 20 * 1024 * 1024   # resident-weight / per-tile weight budget
_VMEM_BUDGET = 44 * 1024 * 1024          # total working-set target (fits v7x 64 MiB/TC)


def _round_up(x, m):
    return (x + m - 1) // m * m


def _weight_spec(shape, index_map, single_buffer):
    """BlockSpec for VMEM-resident weights; single-buffered when supported."""
    if single_buffer and hasattr(pl, "Buffered"):
        try:
            return pl.BlockSpec(shape, index_map, pipeline_mode=pl.Buffered(1))
        except Exception:  # pipeline_mode not supported in this JAX build
            pass
    return pl.BlockSpec(shape, index_map)


def _ffn_kernel(x_ref, w1_ref, b1_ref, w2_ref, b2_ref, o_ref, acc_ref):
    # x: (TB, In_p) f32   w1: (In_p, TH) bf16   b1: (1, TH) f32
    # w2: (TH, Out_p) bf16   b2: (1, Out_p) f32   o: (TB, Out_p)   acc: f32 scratch
    h_idx = pl.program_id(1)

    @pl.when(h_idx == 0)
    def _():
        acc_ref[...] = jnp.zeros_like(acc_ref)

    # Cast to bf16 in-kernel (VPU, hidden under the MXU); f32 accumulation.
    x = x_ref[...].astype(jnp.bfloat16)
    h = jnp.dot(x, w1_ref[...], preferred_element_type=jnp.float32)
    h = jnp.maximum(h + b1_ref[...], 0.0)          # per-H-tile bias + ReLU (exact)
    acc_ref[...] += jnp.dot(h.astype(jnp.bfloat16), w2_ref[...],
                            preferred_element_type=jnp.float32)

    @pl.when(h_idx == pl.num_programs(1) - 1)
    def _():
        o_ref[...] = (acc_ref[...] + b2_ref[...]).astype(o_ref.dtype)


def prepare_ffn_params(w1, b1, w2, b2):
    """One-time pad + bf16 cast of the weights (hoisted out of the per-call path).

    w1: (In, H), b1: (H,), w2: (H, Out), b2: (Out,).  Returns padded params and meta.
    """
    In, H = w1.shape
    H2, Out = w2.shape
    assert H2 == H
    In_p = _round_up(In, 128)
    Out_p = _round_up(Out, 128)
    H_p = _round_up(H, 128)

    # Choose the hidden-dim tile: resident if the full weights fit the budget,
    # otherwise stream double-buffered (In_p, TH)/(TH, Out_p) tiles.
    per_h_bytes = 2 * (In_p + Out_p)            # bf16 W1 column + W2 row
    if H_p * per_h_bytes <= _WEIGHT_VMEM_BUDGET:
        TH = H_p
    else:
        TH = max(128, (_WEIGHT_VMEM_BUDGET // (2 * per_h_bytes)) // 128 * 128)
    H_pp = _round_up(H_p, TH)

    w1_p = jnp.zeros((In_p, H_pp), jnp.bfloat16).at[:In, :H].set(w1.astype(jnp.bfloat16))
    b1_p = jnp.zeros((1, H_pp), jnp.float32).at[0, :H].set(b1.astype(jnp.float32))
    w2_p = jnp.zeros((H_pp, Out_p), jnp.bfloat16).at[:H, :Out].set(w2.astype(jnp.bfloat16))
    b2_p = jnp.zeros((1, Out_p), jnp.float32).at[0, :Out].set(b2.astype(jnp.float32))

    meta = dict(in_features=In, out_features=Out, block_h=TH)
    return (w1_p, b1_p, w2_p, b2_p), meta


def feedforward_net(x, w1_p, b1_p, w2_p, b2_p, *, out_features, block_h,
                    tb=512, out_dtype=jnp.float32, single_buffer_weights=True):
    """Fused flatten->fc1->ReLU->fc2.  x: (B, In) float; params from prepare_ffn_params."""
    B, In = x.shape
    In_p, H_pp = w1_p.shape
    Out_p = w2_p.shape[1]
    Out = out_features
    TH = block_h
    assert In <= In_p and Out <= Out_p and H_pp % TH == 0
    nH = H_pp // TH
    sb = bool(single_buffer_weights) and nH == 1     # resident weights -> 1 buffer

    out_isz = jnp.dtype(out_dtype).itemsize
    wbuf = 1 if sb else 2

    def vmem_est(tb_):
        return (2 * tb_ * In_p * 4                   # x tile, f32, double-buffered
                + 2 * tb_ * Out_p * out_isz          # out tile, double-buffered
                + tb_ * Out_p * 4                    # f32 accumulator scratch
                + tb_ * TH * 6                       # hidden f32 + bf16 temporaries
                + wbuf * ((In_p + Out_p) * TH * 2 + (TH + Out_p) * 4))

    # Batch tile: bf16 sublane grain is 16; shrink to fit the VMEM budget.
    B16 = _round_up(B, 16)
    TB = max(16, min(_round_up(tb, 16), B16))
    while TB > 16 and vmem_est(TB) > _VMEM_BUDGET:
        TB = max(16, _round_up(TB // 2, 16))
    if B16 <= TB and B16 >= 32:
        # Single batch tile but enough rows: split so both v7x TCs get work.
        TB = _round_up(B16 // 2, 16)
    B_p = _round_up(B, TB)
    nB = B_p // TB

    # Pad x (kept f32; bf16 cast happens inside the kernel) only when needed.
    if (B_p, In_p) != (B, In):
        x_p = jnp.zeros((B_p, In_p), x.dtype).at[:B, :In].set(x)
    else:
        x_p = x

    flops = 2 * B_p * (In_p * H_pp + H_pp * Out_p)
    w_reads = nB if nH > 1 else 1                    # streamed weights re-read per batch tile
    bytes_accessed = (B_p * In_p * x.dtype.itemsize
                      + w_reads * ((In_p + Out_p) * H_pp * 2 + (H_pp + Out_p) * 4)
                      + B_p * Out_p * out_isz)
    cost = pl.CostEstimate(flops=int(flops), transcendentals=0,
                           bytes_accessed=int(bytes_accessed))

    vmem_limit = int(min(max(vmem_est(TB) * 5 // 4 + (1 << 20), 4 << 20), 56 << 20))

    out_p = pl.pallas_call(
        _ffn_kernel,
        out_shape=jax.ShapeDtypeStruct((B_p, Out_p), out_dtype),
        grid_spec=pltpu.PrefetchScalarGridSpec(
            num_scalar_prefetch=0,
            grid=(nB, nH),                           # batch parallel, hidden reduction last
            in_specs=[
                pl.BlockSpec((TB, In_p), lambda i, h: (i, 0)),        # activations
                _weight_spec((In_p, TH), lambda i, h: (0, h), sb),    # W1 column tile
                _weight_spec((1, TH), lambda i, h: (0, h), sb),       # b1 tile
                _weight_spec((TH, Out_p), lambda i, h: (h, 0), sb),   # W2 row tile
                _weight_spec((1, Out_p), lambda i, h: (0, 0), sb),    # b2
            ],
            out_specs=pl.BlockSpec((TB, Out_p), lambda i, h: (i, 0)),
            scratch_shapes=[pltpu.VMEM((TB, Out_p), jnp.float32)],
        ),
        compiler_params=pltpu.CompilerParams(
            dimension_semantics=("parallel", "arbitrary"),
            vmem_limit_bytes=vmem_limit),
        cost_estimate=cost,
    )(x_p, w1_p, b1_p, w2_p, b2_p)

    return out_p[:B, :Out]


if __name__ == "__main__":
    # Module hyper-params: input (batch, C, H, W) flattened -> input_size = C*H*W.
    batch, C, Hs, Ws = 2, 4, 4, 4
    input_size = C * Hs * Ws          # 64
    hidden_size = 32
    output_size = 8

    key = jax.random.PRNGKey(0)
    kx, k1, kb1, k2, kb2 = jax.random.split(key, 5)

    x_nchw = jax.random.normal(kx, (batch, C, Hs, Ws), dtype=jnp.float32)

    # PyTorch Linear stores W as (out, in); transpose to (in, out) for x @ W.
    bound1 = input_size ** -0.5
    w1_t = jax.random.uniform(k1, (hidden_size, input_size), jnp.float32, -bound1, bound1)
    b1 = jax.random.uniform(kb1, (hidden_size,), jnp.float32, -bound1, bound1)
    bound2 = hidden_size ** -0.5
    w2_t = jax.random.uniform(k2, (output_size, hidden_size), jnp.float32, -bound2, bound2)
    b2 = jax.random.uniform(kb2, (output_size,), jnp.float32, -bound2, bound2)

    # Glue: flatten exactly like x.view(x.size(0), -1); transpose weights.
    x_flat = x_nchw.reshape(batch, -1)
    w1 = w1_t.T   # (input_size, hidden_size)
    w2 = w2_t.T   # (hidden_size, output_size)

    # One-time weight preparation (pad + bf16 cast), outside the per-call path.
    params, meta = prepare_ffn_params(w1, b1, w2, b2)

    def make_fwd(single_buffer):
        return jax.jit(functools.partial(
            feedforward_net,
            out_features=meta["out_features"],
            block_h=meta["block_h"],
            single_buffer_weights=single_buffer))

    try:
        out = jax.block_until_ready(make_fwd(True)(x_flat, *params))
    except Exception:
        # Fallback for JAX builds that reject single-buffered weight BlockSpecs.
        out = jax.block_until_ready(make_fwd(False)(x_flat, *params))

    # f32 reference (same math as the PyTorch forward).  Kernel uses bf16 MXU
    # inputs with f32 accumulation, so compare with bf16-level tolerance.
    ref = jnp.maximum(x_flat @ w1 + b1, 0.0) @ w2 + b2
    assert out.shape == (batch, output_size)
    assert out.dtype == jnp.float32
    assert jnp.allclose(out, ref, atol=5e-2, rtol=5e-2), (
        f"max abs err {jnp.max(jnp.abs(out - ref))}")

    print("KERNEL_OK")
</pallas_src>

<mosaic_0001>
module attributes {stable_mosaic.version = 11 : i64} {
  func.func @_ffn_kernel(%arg0: i32, %arg1: i32, %arg2: memref<16x128xf32, #tpu.memory_space<vmem>>, %arg3: memref<128x128xbf16, #tpu.memory_space<vmem>>, %arg4: memref<1x128xf32, #tpu.memory_space<vmem>>, %arg5: memref<128x128xbf16, #tpu.memory_space<vmem>>, %arg6: memref<1x128xf32, #tpu.memory_space<vmem>>, %arg7: memref<16x128xf32, #tpu.memory_space<vmem>>, %arg8: memref<16x128xf32, #tpu.memory_space<vmem>>) attributes {dimension_semantics = [#tpu.dimension_semantics<parallel>, #tpu.dimension_semantics<arbitrary>], iteration_bounds = array<i64: 1, 1>, scalar_prefetch = 0 : i64, scratch_operands = 1 : i64, tpu.core_type = #tpu.core_type<tc>, window_params = [{transform_indices = @transform_0, window_bounds = array<i64: 16, 128>}, {pipeline_mode = #tpu.pipeline_mode<synchronous>, transform_indices = @transform_1, window_bounds = array<i64: 128, 128>}, {pipeline_mode = #tpu.pipeline_mode<synchronous>, transform_indices = @transform_2, window_bounds = array<i64: 1, 128>}, {pipeline_mode = #tpu.pipeline_mode<synchronous>, transform_indices = @transform_3, window_bounds = array<i64: 128, 128>}, {pipeline_mode = #tpu.pipeline_mode<synchronous>, transform_indices = @transform_4, window_bounds = array<i64: 1, 128>}, {transform_indices = @transform_5, window_bounds = array<i64: 16, 128>}]} {
    %c0_i32 = arith.constant 0 : i32
    %0 = arith.cmpi eq, %arg1, %c0_i32 : i32
    %1 = arith.extui %0 : i1 to i32
    %c0_i32_0 = arith.constant 0 : i32
    %2 = arith.cmpi ne, %1, %c0_i32_0 : i32
    scf.if %2 {
      %cst_16 = arith.constant 0.000000e+00 : f32
      %21 = vector.broadcast %cst_16 : f32 to vector<16x128xf32>
      %c0_17 = arith.constant 0 : index
      %c0_18 = arith.constant 0 : index
      %22 = vector.load %arg8[%c0_17, %c0_18] : memref<16x128xf32, #tpu.memory_space<vmem>>, vector<16x128xf32>
      tpu.vector_store %arg8[%c0_17, %c0_18], %21 {strides = array<i32>} : memref<16x128xf32, #tpu.memory_space<vmem>>, vector<16x128xf32>,
    } else {
    }
    %c0 = arith.constant 0 : index
    %c0_1 = arith.constant 0 : index
    %3 = vector.load %arg2[%c0, %c0_1] : memref<16x128xf32, #tpu.memory_space<vmem>>, vector<16x128xf32>
    %4 = arith.truncf %3 : vector<16x128xf32> to vector<16x128xbf16>
    %c0_2 = arith.constant 0 : index
    %c0_3 = arith.constant 0 : index
    %5 = vector.load %arg3[%c0_2, %c0_3] : memref<128x128xbf16, #tpu.memory_space<vmem>>, vector<128x128xbf16>
    %cst = arith.constant dense<0.000000e+00> : vector<16x128xf32>
    %6 = tpu.matmul %4, %5, %cst {dimension_numbers = #tpu.dot_dimension_numbers<[1], [0], [0], [1], [0, 0, 1, 1], [], []>} : vector<16x128xbf16>, vector<128x128xbf16>, vector<16x128xf32> -> vector<16x128xf32>
    %c0_4 = arith.constant 0 : index
    %c0_5 = arith.constant 0 : index
    %7 = vector.load %arg4[%c0_4, %c0_5] : memref<1x128xf32, #tpu.memory_space<vmem>>, vector<1x128xf32>
    %8 = vector.broadcast %7 : vector<1x128xf32> to vector<16x128xf32>
    %9 = arith.addf %6, %8 : vector<16x128xf32>
    %cst_6 = arith.constant 0.000000e+00 : f32
    %10 = vector.broadcast %cst_6 : f32 to vector<16x128xf32>
    %11 = arith.maximumf %9, %10 : vector<16x128xf32>
    %c0_7 = arith.constant 0 : index
    %c0_8 = arith.constant 0 : index
    %12 = vector.load %arg8[%c0_7, %c0_8] : memref<16x128xf32, #tpu.memory_space<vmem>>, vector<16x128xf32>
    %13 = arith.truncf %11 : vector<16x128xf32> to vector<16x128xbf16>
    %c0_9 = arith.constant 0 : index
    %c0_10 = arith.constant 0 : index
    %14 = vector.load %arg5[%c0_9, %c0_10] : memref<128x128xbf16, #tpu.memory_space<vmem>>, vector<128x128xbf16>
    %cst_11 = arith.constant dense<0.000000e+00> : vector<16x128xf32>
    %15 = tpu.matmul %13, %14, %cst_11 {dimension_numbers = #tpu.dot_dimension_numbers<[1], [0], [0], [1], [0, 0, 1, 1], [], []>} : vector<16x128xbf16>, vector<128x128xbf16>, vector<16x128xf32> -> vector<16x128xf32>
    %16 = arith.addf %12, %15 : vector<16x128xf32>
    %c0_12 = arith.constant 0 : index
    %c0_13 = arith.constant 0 : index
    %17 = vector.load %arg8[%c0_12, %c0_13] : memref<16x128xf32, #tpu.memory_space<vmem>>, vector<16x128xf32>
    tpu.vector_store %arg8[%c0_12, %c0_13], %16 {strides = array<i32>} : memref<16x128xf32, #tpu.memory_space<vmem>>, vector<16x128xf32>,
    %c0_i32_14 = arith.constant 0 : i32
    %18 = arith.cmpi eq, %arg1, %c0_i32_14 : i32
    %19 = arith.extui %18 : i1 to i32
    %c0_i32_15 = arith.constant 0 : i32
    %20 = arith.cmpi ne, %19, %c0_i32_15 : i32
    scf.if %20 {
      %c0_16 = arith.constant 0 : index
      %c0_17 = arith.constant 0 : index
      %21 = vector.load %arg8[%c0_16, %c0_17] : memref<16x128xf32, #tpu.memory_space<vmem>>, vector<16x128xf32>
      %c0_18 = arith.constant 0 : index
      %c0_19 = arith.constant 0 : index
      %22 = vector.load %arg6[%c0_18, %c0_19] : memref<1x128xf32, #tpu.memory_space<vmem>>, vector<1x128xf32>
      %23 = vector.broadcast %22 : vector<1x128xf32> to vector<16x128xf32>
      %24 = arith.addf %21, %23 : vector<16x128xf32>
      %c0_20 = arith.constant 0 : index
      %c0_21 = arith.constant 0 : index
      %25 = vector.load %arg7[%c0_20, %c0_21] : memref<16x128xf32, #tpu.memory_space<vmem>>, vector<16x128xf32>
      tpu.vector_store %arg7[%c0_20, %c0_21], %24 {strides = array<i32>} : memref<16x128xf32, #tpu.memory_space<vmem>>, vector<16x128xf32>,
    } else {
    }
    return
  }
  func.func @transform_0(%arg0: i32, %arg1: i32) -> (i32, i32) {
    %c0_i32 = arith.constant 0 : i32
    %c0_i32_0 = arith.constant 0 : i32
    return %arg0, %c0_i32 : i32, i32
  }
  func.func @transform_1(%arg0: i32, %arg1: i32) -> (i32, i32) {
    %c0_i32 = arith.constant 0 : i32
    %c0_i32_0 = arith.constant 0 : i32
    return %c0_i32, %arg1 : i32, i32
  }
  func.func @transform_2(%arg0: i32, %arg1: i32) -> (i32, i32) {
    %c0_i32 = arith.constant 0 : i32
    %c0_i32_0 = arith.constant 0 : i32
    return %c0_i32, %arg1 : i32, i32
  }
  func.func @transform_3(%arg0: i32, %arg1: i32) -> (i32, i32) {
    %c0_i32 = arith.constant 0 : i32
    %c0_i32_0 = arith.constant 0 : i32
    return %arg1, %c0_i32 : i32, i32
  }
  func.func @transform_4(%arg0: i32, %arg1: i32) -> (i32, i32) {
    %c0_i32 = arith.constant 0 : i32
    %c0_i32_0 = arith.constant 0 : i32
    %c0_i32_1 = arith.constant 0 : i32
    return %c0_i32, %c0_i32_0 : i32, i32
  }
  func.func @transform_5(%arg0: i32, %arg1: i32) -> (i32, i32) {
    %c0_i32 = arith.constant 0 : i32
    %c0_i32_0 = arith.constant 0 : i32
    return %arg0, %c0_i32 : i32, i32
  }
}

module attributes {stable_mosaic.version = 11 : i64} {
  func.func @_ffn_kernel(%arg0: i32, %arg1: i32, %arg2: memref<16x128xf32, #tpu.memory_space<vmem>>, %arg3: memref<128x128xbf16, #tpu.memory_space<vmem>>, %arg4: memref<1x128xf32, #tpu.memory_space<vmem>>, %arg5: memref<128x128xbf16, #tpu.memory_space<vmem>>, %arg6: memref<1x128xf32, #tpu.memory_space<vmem>>, %arg7: memref<16x128xf32, #tpu.memory_space<vmem>>, %arg8: memref<16x128xf32, #tpu.memory_space<vmem>>) attributes {dimension_semantics = [#tpu.dimension_semantics<parallel>, #tpu.dimension_semantics<arbitrary>], iteration_bounds = array<i64: 1, 1>, scalar_prefetch = 0 : i64, scratch_operands = 1 : i64, tpu.core_type = #tpu.core_type<tc>, window_params = [{transform_indices = @transform_0, window_bounds = array<i64: 16, 128>}, {transform_indices = @transform_1, window_bounds = array<i64: 128, 128>}, {transform_indices = @transform_2, window_bounds = array<i64: 1, 128>}, {transform_indices = @transform_3, window_bounds = array<i64: 128, 128>}, {pipeline_mode = #tpu.pipeline_mode<synchronous>, transform_indices = @transform_4, window_bounds = array<i64: 1, 128>}, {transform_indices = @transform_5, window_bounds = array<i64: 16, 128>}]} {
    %c0_i32 = arith.constant 0 : i32
    %0 = arith.cmpi eq, %arg1, %c0_i32 : i32
    %1 = arith.extui %0 : i1 to i32
    %c0_i32_0 = arith.constant 0 : i32
    %2 = arith.cmpi ne, %1, %c0_i32_0 : i32
    scf.if %2 {
      %cst_16 = arith.constant 0.000000e+00 : f32
      %21 = vector.broadcast %cst_16 : f32 to vector<16x128xf32>
      %c0_17 = arith.constant 0 : index
      %c0_18 = arith.constant 0 : index
      %22 = vector.load %arg8[%c0_17, %c0_18] : memref<16x128xf32, #tpu.memory_space<vmem>>, vector<16x128xf32>
      tpu.vector_store %arg8[%c0_17, %c0_18], %21 {strides = array<i32>} : memref<16x128xf32, #tpu.memory_space<vmem>>, vector<16x128xf32>,
    } else {
    }
    %c0 = arith.constant 0 : index
    %c0_1 = arith.constant 0 : index
    %3 = vector.load %arg2[%c0, %c0_1] : memref<16x128xf32, #tpu.memory_space<vmem>>, vector<16x128xf32>
    %4 = arith.truncf %3 : vector<16x128xf32> to vector<16x128xbf16>
    %c0_2 = arith.constant 0 : index
    %c0_3 = arith.constant 0 : index
    %5 = vector.load %arg3[%c0_2, %c0_3] : memref<128x128xbf16, #tpu.memory_space<vmem>>, vector<128x128xbf16>
    %cst = arith.constant dense<0.000000e+00> : vector<16x128xf32>
    %6 = tpu.matmul %4, %5, %cst {dimension_numbers = #tpu.dot_dimension_numbers<[1], [0], [0], [1], [0, 0, 1, 1], [], []>} : vector<16x128xbf16>, vector<128x128xbf16>, vector<16x128xf32> -> vector<16x128xf32>
    %c0_4 = arith.constant 0 : index
    %c0_5 = arith.constant 0 : index
    %7 = vector.load %arg4[%c0_4, %c0_5] : memref<1x128xf32, #tpu.memory_space<vmem>>, vector<1x128xf32>
    %8 = vector.broadcast %7 : vector<1x128xf32> to vector<16x128xf32>
    %9 = arith.addf %6, %8 : vector<16x128xf32>
    %cst_6 = arith.constant 0.000000e+00 : f32
    %10 = vector.broadcast %cst_6 : f32 to vector<16x128xf32>
    %11 = arith.maximumf %9, %10 : vector<16x128xf32>
    %c0_7 = arith.constant 0 : index
    %c0_8 = arith.constant 0 : index
    %12 = vector.load %arg8[%c0_7, %c0_8] : memref<16x128xf32, #tpu.memory_space<vmem>>, vector<16x128xf32>
    %13 = arith.truncf %11 : vector<16x128xf32> to vector<16x128xbf16>
    %c0_9 = arith.constant 0 : index
    %c0_10 = arith.constant 0 : index
    %14 = vector.load %arg5[%c0_9, %c0_10] : memref<128x128xbf16, #tpu.memory_space<vmem>>, vector<128x128xbf16>
    %cst_11 = arith.constant dense<0.000000e+00> : vector<16x128xf32>
    %15 = tpu.matmul %13, %14, %cst_11 {dimension_numbers = #tpu.dot_dimension_numbers<[1], [0], [0], [1], [0, 0, 1, 1], [], []>} : vector<16x128xbf16>, vector<128x128xbf16>, vector<16x128xf32> -> vector<16x128xf32>
    %16 = arith.addf %12, %15 : vector<16x128xf32>
    %c0_12 = arith.constant 0 : index
    %c0_13 = arith.constant 0 : index
    %17 = vector.load %arg8[%c0_12, %c0_13] : memref<16x128xf32, #tpu.memory_space<vmem>>, vector<16x128xf32>
    tpu.vector_store %arg8[%c0_12, %c0_13], %16 {strides = array<i32>} : memref<16x128xf32, #tpu.memory_space<vmem>>, vector<16x128xf32>,
    %c0_i32_14 = arith.constant 0 : i32
    %18 = arith.cmpi eq, %arg1, %c0_i32_14 : i32
    %19 = arith.extui %18 : i1 to i32
    %c0_i32_15 = arith.constant 0 : i32
    %20 = arith.cmpi ne, %19, %c0_i32_15 : i32
    scf.if %20 {
      %c0_16 = arith.constant 0 : index
      %c0_17 = arith.constant 0 : index
      %21 = vector.load %arg8[%c0_16, %c0_17] : memref<16x128xf32, #tpu.memory_space<vmem>>, vector<16x128xf32>
      %c0_18 = arith.constant 0 : index
      %c0_19 = arith.constant 0 : index
      %22 = vector.load %arg6[%c0_18, %c0_19] : memref<1x128xf32, #tpu.memory_space<vmem>>, vector<1x128xf32>
      %23 = vector.broadcast %22 : vector<1x128xf32> to vector<16x128xf32>
      %24 = arith.addf %21, %23 : vector<16x128xf32>
      %c0_20 = arith.constant 0 : index
      %c0_21 = arith.constant 0 : index
      %25 = vector.load %arg7[%c0_20, %c0_21] : memref<16x128xf32, #tpu.memory_space<vmem>>, vector<16x128xf32>
      tpu.vector_store %arg7[%c0_20, %c0_21], %24 {strides = array<i32>} : memref<16x128xf32, #tpu.memory_space<vmem>>, vector<16x128xf32>,
    } else {
    }
    return
  }
  func.func @transform_0(%arg0: i32, %arg1: i32) -> (i32, i32) {
    %c0_i32 = arith.constant 0 : i32
    %c0_i32_0 = arith.constant 0 : i32
    return %arg0, %c0_i32 : i32, i32
  }
  func.func @transform_1(%arg0: i32, %arg1: i32) -> (i32, i32) {
    %c0_i32 = arith.constant 0 : i32
    %c0_i32_0 = arith.constant 0 : i32
    return %c0_i32, %arg1 : i32, i32
  }
  func.func @transform_2(%arg0: i32, %arg1: i32) -> (i32, i32) {
    %c0_i32 = arith.constant 0 : i32
    %c0_i32_0 = arith.constant 0 : i32
    return %c0_i32, %arg1 : i32, i32
  }
  func.func @transform_3(%arg0: i32, %arg1: i32) -> (i32, i32) {
    %c0_i32 = arith.constant 0 : i32
    %c0_i32_0 = arith.constant 0 : i32
    return %arg1, %c0_i32 : i32, i32
  }
  func.func @transform_4(%arg0: i32, %arg1: i32) -> (i32, i32) {
    %c0_i32 = arith.constant 0 : i32
    %c0_i32_0 = arith.constant 0 : i32
    %c0_i32_1 = arith.constant 0 : i32
    return %c0_i32, %c0_i32_0 : i32, i32
  }
  func.func @transform_5(%arg0: i32, %arg1: i32) -> (i32, i32) {
    %c0_i32 = arith.constant 0 : i32
    %c0_i32_0 = arith.constant 0 : i32
    return %arg0, %c0_i32 : i32, i32
  }
}

</mosaic_0001>

<bundles_post_ra>
// kernel: feedforward_net.1
= control target key start
LH: loop header
LB: loop body
LE: loop exit
PB: predicated region body
PF: predicated region fallthrough
CT: control target
= control target key end

     0   :  { %10 = vsyncpa [#allocation4], 0  ;;  %s445_s0 = inlined_call_operand.vmem [shape: f32[16,128], index: 0, kind: input, shape index: {}]   ;;  %s446_s1 = inlined_call_operand.hbm [shape: bf16[128,128], index: 1, kind: input, shape index: {}]   ;;  %s447_s2 = inlined_call_operand.vmem [shape: f32[1,128], index: 2, kind: input, shape index: {}]   ;;  %s448_s3 = inlined_call_operand.hbm [shape: bf16[128,128], index: 3, kind: input, shape index: {}]   ;;  %s449_s4 = inlined_call_operand.vmem [shape: f32[1,128], index: 4, kind: input, shape index: {}]   ;;  %s450_s5 = inlined_call_operand.vmem [shape: f32[16,128], index: 5, kind: output, shape index: {}]  }
   0x1   :  { %s18_s20 = sshll.u32 %s446_s1, 4  ;;  %s19_s20 = int_to_ptr.hbm [resolvable:$true] %s18_s20 }
   0x2   :  { %11 = vsyncpa [#allocation6], 0  ;;  %s387_s21 = smov [#allocation3]   ;;  %s33_s25 = sshll.u32 %s448_s3, 4  ;;  %s34_s25 = int_to_ptr.hbm [resolvable:$true] %s33_s25 }
   0x3   :  { %s20_s22 = sshll.u32 %s387_s21, 4  ;;  %s388_s26 = smov 64   ;;  %s21_s22 = int_to_ptr.vmem [resolvable:$true] %s20_s22 }
   0x4   :  { %s389_s27 = smov 4   ;;  %s390_s28 = smov [#allocation5]  }
   0x5   :  { %26 = dma.hbm_to_vmem [thread:$0]  %s19_s20, 1024, %s21_s22, [#allocation4], %s388_s26, %s388_s26, %s389_s27  }
   0x6   :  { %s35_s29 = sshll.u32 %s390_s28, 4  ;;  %s36_s29 = int_to_ptr.vmem [resolvable:$true] %s35_s29 }
   0x7   :  { %41 = dma.hbm_to_vmem [thread:$0]  %s34_s25, 1024, %s36_s29, [#allocation6], %s388_s26, %s388_s26, %s389_s27  }
   0x8   :  { %383 = dma.done.wait [#allocation4], 1024  }
   0x9   :  { %384 = vsyncadd [#allocation4], 4294966272 }
   0xa   :  { %385 = dma.done.wait [#allocation6], 1024  }
   0xb   :  { %386 = vsyncadd [#allocation6], 4294966272  ;;  %v320_v0 = vld [vmem:[#allocation3 + $0x38] sm:$0xff]  ;;  %v319_v1 = vld [vmem:[#allocation3 + $0x30] sm:$0xff] }
   0xc   :  { %129 = vmatpush.bf16.msra.mxu0 %v320_v0  ;;  %v328_v2 = vld [vmem:[#allocation5 + $0x38] sm:$0xff]  ;;  %v327_v3 = vld [vmem:[#allocation5 + $0x30] sm:$0xff]  ;;  %v318_v4 = vld [vmem:[#allocation3 + $0x28] sm:$0xff] }
   0xd   :  { %212 = vmatpush.bf16.msra.mxu1 %v328_v2  ;;  %v326_v5 = vld [vmem:[#allocation5 + $0x28] sm:$0xff]  ;;  %v317_v6 = vld [vmem:[#allocation3 + $0x20] sm:$0xff]  ;;  %v316_v8 = vld [vmem:[#allocation3 + $0x18] sm:$0xff] }
   0xe   :  { %v325_v7 = vld [vmem:[#allocation5 + $0x20] sm:$0xff]  ;;  %v315_v9 = vld [vmem:[#allocation3 + $0x10] sm:$0xff]  ;;  %v314_v10 = vld [vmem:[#allocation3 + $0x8] sm:$0xff] }
   0xf   :  { %v313_v11 = vld [vmem:[#allocation3] sm:$0xff]  ;;  %v59_v13 = vld [vmem:[%s445_s0 + $0x8] sm:$0xff]  ;;  %v324_v15 = vld [vmem:[#allocation5 + $0x18] sm:$0xff] }
  0x10   :  { %130 = vmatpush.bf16.msra.mxu0 %v319_v1  ;;  %v58_v12 = vld [vmem:[%s445_s0] sm:$0xff]  ;;  %v323_v16 = vld [vmem:[#allocation5 + $0x10] sm:$0xff]  ;;  %v322_v17 = vld [vmem:[#allocation5 + $0x8] sm:$0xff] }
  0x11   :  { %213 = vmatpush.bf16.msra.mxu1 %v327_v3  ;;  %v60_v14 = vpack.c.bf16 %v59_v13, %v58_v12  ;;  %v321_v18 = vld [vmem:[#allocation5] sm:$0xff] }
  0x12   :  { %v333_v20 = vld [vmem:[%s447_s2] ss:$0 sm:$0xff] }
  0x13   :  { %v334_v27 = vld [vmem:[%s449_s4] ss:$0 sm:$0xff] }
  0x14   :  { %131 = vmatpush.bf16.msra.mxu0 %v318_v4 }
  0x15   :  { %214 = vmatpush.bf16.msra.mxu1 %v326_v5 }
  0x18   :  { %132 = vmatpush.bf16.msra.mxu0 %v317_v6 }
  0x19   :  { %215 = vmatpush.bf16.msra.mxu1 %v325_v7 }
  0x1c   :  { %133 = vmatpush.bf16.msra.mxu0 %v316_v8 }
  0x1d   :  { %216 = vmatpush.bf16.msra.mxu1 %v324_v15 }
  0x20   :  { %134 = vmatpush.bf16.msra.mxu0 %v315_v9 }
  0x21   :  { %217 = vmatpush.bf16.msra.mxu1 %v323_v16 }
  0x24   :  { %135 = vmatpush.bf16.msra.mxu0 %v314_v10 }
  0x25   :  { %218 = vmatpush.bf16.msra.mxu1 %v322_v17 }
  0x28   :  { %136 = vmatpush.bf16.msra.mxu0 %v313_v11 }
  0x29   :  { %219 = vmatpush.bf16.msra.mxu1 %v321_v18 }
  0x2b   :  { %137 = vmatmul.bf16.vlgmr.msra.gmra.mxu0 %v60_v14 }
  0xa8   :  { %v138_v19 = vpop.f32.mrf.mxu0 }
  0xa9   :  { %v139_v21 = vadd.f32 %v333_v20, %v138_v19 }
  0xab   :  { %v143_v24 = vmax.f32 %v139_v21, 0.0 }
  0xb0   :  { %v140_v22 = vpop.f32.mrf.mxu0 }
  0xb1   :  { %v141_v23 = vadd.f32 %v333_v20, %v140_v22 }
  0xb3   :  { %v144_v25 = vmax.f32 %v141_v23, 0.0 }
  0xb5   :  { %v147_v26 = vpack.c.bf16 %v144_v25, %v143_v24 }
  0xb7   :  { %220 = vmatmul.bf16.vlgmr.msra.gmra.mxu1 %v147_v26 }
 0x134   :  { %v221_v28 = vpop.f32.mrf.mxu1 }
 0x135   :  { %v239_v29 = vadd.f32 %v334_v27, %v221_v28 }
 0x137   :  { %241 = vst [vmem:[%s450_s5] sm:$0xff] %v239_v29 }
 0x13c   :  { %v223_v30 = vpop.f32.mrf.mxu1 }
 0x13d   :  { %v240_v31 = vadd.f32 %v334_v27, %v223_v30 }
 0x13f   :  { %242 = vst [vmem:[%s450_s5 + $0x8] sm:$0xff] %v240_v31 }
 0x140   :  { %247 = vsyncpa [#allocation4], 1 }
 0x141   :  { %248 = vsyncpa [#allocation6], 1 }

// kernel: feedforward_net.1
= control target key start
LH: loop header
LB: loop body
LE: loop exit
PB: predicated region body
PF: predicated region fallthrough
CT: control target
= control target key end

     0   :  { %10 = vsyncpa [#allocation4], 0  ;;  %s445_s0 = inlined_call_operand.vmem [shape: f32[16,128], index: 0, kind: input, shape index: {}]   ;;  %s446_s1 = inlined_call_operand.hbm [shape: bf16[128,128], index: 1, kind: input, shape index: {}]   ;;  %s447_s2 = inlined_call_operand.vmem [shape: f32[1,128], index: 2, kind: input, shape index: {}]   ;;  %s448_s3 = inlined_call_operand.hbm [shape: bf16[128,128], index: 3, kind: input, shape index: {}]   ;;  %s449_s4 = inlined_call_operand.vmem [shape: f32[1,128], index: 4, kind: input, shape index: {}]   ;;  %s450_s5 = inlined_call_operand.vmem [shape: f32[16,128], index: 5, kind: output, shape index: {}]  }
   0x1   :  { %s18_s20 = sshll.u32 %s446_s1, 4  ;;  %s19_s20 = int_to_ptr.hbm [resolvable:$true] %s18_s20 }
   0x2   :  { %11 = vsyncpa [#allocation6], 0  ;;  %s387_s21 = smov [#allocation3]   ;;  %s33_s25 = sshll.u32 %s448_s3, 4  ;;  %s34_s25 = int_to_ptr.hbm [resolvable:$true] %s33_s25 }
   0x3   :  { %s20_s22 = sshll.u32 %s387_s21, 4  ;;  %s388_s26 = smov 64   ;;  %s21_s22 = int_to_ptr.vmem [resolvable:$true] %s20_s22 }
   0x4   :  { %s389_s27 = smov 4   ;;  %s390_s28 = smov [#allocation5]  }
   0x5   :  { %26 = dma.hbm_to_vmem [thread:$0]  %s19_s20, 1024, %s21_s22, [#allocation4], %s388_s26, %s388_s26, %s389_s27  }
   0x6   :  { %s35_s29 = sshll.u32 %s390_s28, 4  ;;  %s36_s29 = int_to_ptr.vmem [resolvable:$true] %s35_s29 }
   0x7   :  { %41 = dma.hbm_to_vmem [thread:$0]  %s34_s25, 1024, %s36_s29, [#allocation6], %s388_s26, %s388_s26, %s389_s27  }
   0x8   :  { %383 = dma.done.wait [#allocation4], 1024  }
   0x9   :  { %384 = vsyncadd [#allocation4], 4294966272 }
   0xa   :  { %385 = dma.done.wait [#allocation6], 1024  }
   0xb   :  { %386 = vsyncadd [#allocation6], 4294966272  ;;  %v320_v0 = vld [vmem:[#allocation3 + $0x38] sm:$0xff]  ;;  %v319_v1 = vld [vmem:[#allocation3 + $0x30] sm:$0xff] }
   0xc   :  { %129 = vmatpush.bf16.msra.mxu0 %v320_v0  ;;  %v328_v2 = vld [vmem:[#allocation5 + $0x38] sm:$0xff]  ;;  %v327_v3 = vld [vmem:[#allocation5 + $0x30] sm:$0xff]  ;;  %v318_v4 = vld [vmem:[#allocation3 + $0x28] sm:$0xff] }
   0xd   :  { %212 = vmatpush.bf16.msra.mxu1 %v328_v2  ;;  %v326_v5 = vld [vmem:[#allocation5 + $0x28] sm:$0xff]  ;;  %v317_v6 = vld [vmem:[#allocation3 + $0x20] sm:$0xff]  ;;  %v316_v8 = vld [vmem:[#allocation3 + $0x18] sm:$0xff] }
   0xe   :  { %v325_v7 = vld [vmem:[#allocation5 + $0x20] sm:$0xff]  ;;  %v315_v9 = vld [vmem:[#allocation3 + $0x10] sm:$0xff]  ;;  %v314_v10 = vld [vmem:[#allocation3 + $0x8] sm:$0xff] }
   0xf   :  { %v313_v11 = vld [vmem:[#allocation3] sm:$0xff]  ;;  %v59_v13 = vld [vmem:[%s445_s0 + $0x8] sm:$0xff]  ;;  %v324_v15 = vld [vmem:[#allocation5 + $0x18] sm:$0xff] }
  0x10   :  { %130 = vmatpush.bf16.msra.mxu0 %v319_v1  ;;  %v58_v12 = vld [vmem:[%s445_s0] sm:$0xff]  ;;  %v323_v16 = vld [vmem:[#allocation5 + $0x10] sm:$0xff]  ;;  %v322_v17 = vld [vmem:[#allocation5 + $0x8] sm:$0xff] }
  0x11   :  { %213 = vmatpush.bf16.msra.mxu1 %v327_v3  ;;  %v60_v14 = vpack.c.bf16 %v59_v13, %v58_v12  ;;  %v321_v18 = vld [vmem:[#allocation5] sm:$0xff] }
  0x12   :  { %v333_v20 = vld [vmem:[%s447_s2] ss:$0 sm:$0xff] }
  0x13   :  { %v334_v27 = vld [vmem:[%s449_s4] ss:$0 sm:$0xff] }
  0x14   :  { %131 = vmatpush.bf16.msra.mxu0 %v318_v4 }
  0x15   :  { %214 = vmatpush.bf16.msra.mxu1 %v326_v5 }
  0x18   :  { %132 = vmatpush.bf16.msra.mxu0 %v317_v6 }
  0x19   :  { %215 = vmatpush.bf16.msra.mxu1 %v325_v7 }
  0x1c   :  { %133 = vmatpush.bf16.msra.mxu0 %v316_v8 }
  0x1d   :  { %216 = vmatpush.bf16.msra.mxu1 %v324_v15 }
  0x20   :  { %134 = vmatpush.bf16.msra.mxu0 %v315_v9 }
  0x21   :  { %217 = vmatpush.bf16.msra.mxu1 %v323_v16 }
  0x24   :  { %135 = vmatpush.bf16.msra.mxu0 %v314_v10 }
  0x25   :  { %218 = vmatpush.bf16.msra.mxu1 %v322_v17 }
  0x28   :  { %136 = vmatpush.bf16.msra.mxu0 %v313_v11 }
  0x29   :  { %219 = vmatpush.bf16.msra.mxu1 %v321_v18 }
  0x2b   :  { %137 = vmatmul.bf16.vlgmr.msra.gmra.mxu0 %v60_v14 }
  0xa8   :  { %v138_v19 = vpop.f32.mrf.mxu0 }
  0xa9   :  { %v139_v21 = vadd.f32 %v333_v20, %v138_v19 }
  0xab   :  { %v143_v24 = vmax.f32 %v139_v21, 0.0 }
  0xb0   :  { %v140_v22 = vpop.f32.mrf.mxu0 }
  0xb1   :  { %v141_v23 = vadd.f32 %v333_v20, %v140_v22 }
  0xb3   :  { %v144_v25 = vmax.f32 %v141_v23, 0.0 }
  0xb5   :  { %v147_v26 = vpack.c.bf16 %v144_v25, %v143_v24 }
  0xb7   :  { %220 = vmatmul.bf16.vlgmr.msra.gmra.mxu1 %v147_v26 }
 0x134   :  { %v221_v28 = vpop.f32.mrf.mxu1 }
 0x135   :  { %v239_v29 = vadd.f32 %v334_v27, %v221_v28 }
 0x137   :  { %241 = vst [vmem:[%s450_s5] sm:$0xff] %v239_v29 }
 0x13c   :  { %v223_v30 = vpop.f32.mrf.mxu1 }
 0x13d   :  { %v240_v31 = vadd.f32 %v334_v27, %v223_v30 }
 0x13f   :  { %242 = vst [vmem:[%s450_s5 + $0x8] sm:$0xff] %v240_v31 }
 0x140   :  { %247 = vsyncpa [#allocation4], 1 }
 0x141   :  { %248 = vsyncpa [#allocation6], 1 }

</bundles_post_ra>
